<compile_context>
chip_gen: v7x
topology: tpu7x:2x2x1
jax: 0.10.0
libtpu: 0.0.40
codegen_flags: <defaults>
</compile_context>

<pallas_src>
import numpy as np
import jax
import jax.numpy as jnp
from jax.experimental import pallas as pl
from jax.experimental.pallas import tpu as pltpu

_LANES = 128          # vreg lane width
_MAX_BLOCK_S = 512    # max sublane rows per grid step (512*128*4B = 256 KiB / input / batch row)


def _ae_batch_kernel(pred_ref, gt_ref, o_ref, acc_ref):
    """pred_ref/gt_ref: (N, BLOCK_S, 128) VMEM tiles; o_ref: (N, 1); acc_ref: (N, 128) f32."""
    step = pl.program_id(0)

    @pl.when(step == 0)
    def _():
        acc_ref[...] = jnp.zeros_like(acc_ref)

    d = pred_ref[...].astype(jnp.float32) - gt_ref[...].astype(jnp.float32)
    # Fold the sublane-chunk axis; keep full 128-lane partial sums resident.
    acc_ref[...] += jnp.sum(d, axis=1)

    @pl.when(step == pl.num_programs(0) - 1)
    def _():
        # Single cross-lane reduce + abs + narrow store, once per call.
        o_ref[...] = jnp.abs(
            jnp.sum(acc_ref[...], axis=-1, keepdims=True)
        ).astype(o_ref.dtype)


@jax.jit
def ae_batch(estimated_density_map, gt_map):
    """Pallas equivalent of AEBatch.forward: |sum(est - gt, dims=(1,2,3))|, shape (N,)."""
    assert estimated_density_map.shape == gt_map.shape
    N = estimated_density_map.shape[0]
    F = int(np.prod(estimated_density_map.shape[1:]))  # C*H*W

    # Lane-dense slab: flatten features, zero-pad to a multiple of BLOCK_S*128.
    # (Zero padding is exact: padded entries contribute 0 to the signed sum.)
    s_needed = -(-F // _LANES)                       # ceil(F / 128)
    block_s = min(_MAX_BLOCK_S, ((s_needed + 7) // 8) * 8)
    chunk = block_s * _LANES
    f_pad = -(-F // chunk) * chunk
    n_steps = f_pad // chunk

    def to_slab(x):
        x2 = x.reshape(N, F).astype(jnp.float32)
        x2 = jnp.pad(x2, ((0, 0), (0, f_pad - F)))
        return x2.reshape(N, f_pad // _LANES, _LANES)

    ps = to_slab(estimated_density_map)
    gs = to_slab(gt_map)

    out = pl.pallas_call(
        _ae_batch_kernel,
        out_shape=jax.ShapeDtypeStruct((N, 1), jnp.float32),
        grid=(n_steps,),
        in_specs=[
            pl.BlockSpec((N, block_s, _LANES), lambda j: (0, j, 0)),
            pl.BlockSpec((N, block_s, _LANES), lambda j: (0, j, 0)),
        ],
        out_specs=pl.BlockSpec((N, 1), lambda j: (0, 0)),
        scratch_shapes=[pltpu.VMEM((N, _LANES), jnp.float32)],
        compiler_params=pltpu.CompilerParams(
            dimension_semantics=("arbitrary",),  # reduction axis with resident accumulator
        ),
    )(ps, gs)

    return out[:, 0]


if __name__ == "__main__":
    key = jax.random.PRNGKey(0)
    k1, k2 = jax.random.split(key)
    N, C, H, W = 2, 4, 16, 16
    est = jax.random.uniform(k1, (N, C, H, W), dtype=jnp.float32)
    gt = jax.random.uniform(k2, (N, C, H, W), dtype=jnp.float32)

    out = jax.block_until_ready(ae_batch(est, gt))

    # Correctness check against the plain-JAX reference of the torch op.
    ref = jnp.abs(jnp.sum(est - gt, axis=(1, 2, 3)))
    np.testing.assert_allclose(np.asarray(out), np.asarray(ref), rtol=1e-5, atol=1e-5)

    print("KERNEL_OK")
</pallas_src>

<mosaic_0001>
module attributes {stable_mosaic.version = 11 : i64} {
  func.func @_ae_batch_kernel(%arg0: i32, %arg1: memref<2x8x128xf32, #tpu.memory_space<vmem>>, %arg2: memref<2x8x128xf32, #tpu.memory_space<vmem>>, %arg3: memref<2x1xf32, #tpu.memory_space<vmem>>, %arg4: memref<2x128xf32, #tpu.memory_space<vmem>>) attributes {dimension_semantics = [#tpu.dimension_semantics<arbitrary>], iteration_bounds = array<i64: 1>, scalar_prefetch = 0 : i64, scratch_operands = 1 : i64, tpu.core_type = #tpu.core_type<tc>, window_params = [{transform_indices = @transform_0, window_bounds = array<i64: 2, 8, 128>}, {transform_indices = @transform_1, window_bounds = array<i64: 2, 8, 128>}, {pipeline_mode = #tpu.pipeline_mode<synchronous>, transform_indices = @transform_2, window_bounds = array<i64: 2, 1>}]} {
    %c0_i32 = arith.constant 0 : i32
    %0 = arith.cmpi eq, %arg0, %c0_i32 : i32
    %1 = arith.extui %0 : i1 to i32
    %c0_i32_0 = arith.constant 0 : i32
    %2 = arith.cmpi ne, %1, %c0_i32_0 : i32
    scf.if %2 {
      %cst_12 = arith.constant 0.000000e+00 : f32
      %13 = vector.broadcast %cst_12 : f32 to vector<2x128xf32>
      %c0_13 = arith.constant 0 : index
      %c0_14 = arith.constant 0 : index
      %14 = vector.load %arg4[%c0_13, %c0_14] : memref<2x128xf32, #tpu.memory_space<vmem>>, vector<2x128xf32>
      tpu.vector_store %arg4[%c0_13, %c0_14], %13 {strides = array<i32>} : memref<2x128xf32, #tpu.memory_space<vmem>>, vector<2x128xf32>,
    } else {
    }
    %c0 = arith.constant 0 : index
    %c0_1 = arith.constant 0 : index
    %c0_2 = arith.constant 0 : index
    %3 = vector.load %arg1[%c0, %c0_1, %c0_2] : memref<2x8x128xf32, #tpu.memory_space<vmem>>, vector<2x8x128xf32>
    %c0_3 = arith.constant 0 : index
    %c0_4 = arith.constant 0 : index
    %c0_5 = arith.constant 0 : index
    %4 = vector.load %arg2[%c0_3, %c0_4, %c0_5] : memref<2x8x128xf32, #tpu.memory_space<vmem>>, vector<2x8x128xf32>
    %5 = arith.subf %3, %4 : vector<2x8x128xf32>
    %c0_6 = arith.constant 0 : index
    %c0_7 = arith.constant 0 : index
    %6 = vector.load %arg4[%c0_6, %c0_7] : memref<2x128xf32, #tpu.memory_space<vmem>>, vector<2x128xf32>
    %cst = arith.constant dense<0.000000e+00> : vector<2x128xf32>
    %7 = vector.multi_reduction <add>, %5, %cst [1] : vector<2x8x128xf32> to vector<2x128xf32>
    %8 = arith.addf %6, %7 : vector<2x128xf32>
    %c0_8 = arith.constant 0 : index
    %c0_9 = arith.constant 0 : index
    %9 = vector.load %arg4[%c0_8, %c0_9] : memref<2x128xf32, #tpu.memory_space<vmem>>, vector<2x128xf32>
    tpu.vector_store %arg4[%c0_8, %c0_9], %8 {strides = array<i32>} : memref<2x128xf32, #tpu.memory_space<vmem>>, vector<2x128xf32>,
    %c0_i32_10 = arith.constant 0 : i32
    %10 = arith.cmpi eq, %arg0, %c0_i32_10 : i32
    %11 = arith.extui %10 : i1 to i32
    %c0_i32_11 = arith.constant 0 : i32
    %12 = arith.cmpi ne, %11, %c0_i32_11 : i32
    scf.if %12 {
      %c0_12 = arith.constant 0 : index
      %c0_13 = arith.constant 0 : index
      %13 = vector.load %arg4[%c0_12, %c0_13] : memref<2x128xf32, #tpu.memory_space<vmem>>, vector<2x128xf32>
      %cst_14 = arith.constant dense<0.000000e+00> : vector<2xf32>
      %14 = vector.multi_reduction <add>, %13, %cst_14 [1] : vector<2x128xf32> to vector<2xf32>
      %15 = vector.shape_cast %14 : vector<2xf32> to vector<2x1xf32>
      %16 = math.absf %15 : vector<2x1xf32>
      %c0_15 = arith.constant 0 : index
      %c0_16 = arith.constant 0 : index
      %17 = vector.load %arg3[%c0_15, %c0_16] : memref<2x1xf32, #tpu.memory_space<vmem>>, vector<2x1xf32>
      tpu.vector_store %arg3[%c0_15, %c0_16], %16 {strides = array<i32>} : memref<2x1xf32, #tpu.memory_space<vmem>>, vector<2x1xf32>,
    } else {
    }
    return
  }
  func.func @transform_0(%arg0: i32) -> (i32, i32, i32) {
    %c0_i32 = arith.constant 0 : i32
    %c0_i32_0 = arith.constant 0 : i32
    %c0_i32_1 = arith.constant 0 : i32
    return %c0_i32, %arg0, %c0_i32_0 : i32, i32, i32
  }
  func.func @transform_1(%arg0: i32) -> (i32, i32, i32) {
    %c0_i32 = arith.constant 0 : i32
    %c0_i32_0 = arith.constant 0 : i32
    %c0_i32_1 = arith.constant 0 : i32
    return %c0_i32, %arg0, %c0_i32_0 : i32, i32, i32
  }
  func.func @transform_2(%arg0: i32) -> (i32, i32) {
    %c0_i32 = arith.constant 0 : i32
    %c0_i32_0 = arith.constant 0 : i32
    %c0_i32_1 = arith.constant 0 : i32
    return %c0_i32, %c0_i32_0 : i32, i32
  }
}

</mosaic_0001>

<bundles_post_ra>
// kernel: ae_batch.1
= control target key start
LH: loop header
LB: loop body
LE: loop exit
PB: predicated region body
PF: predicated region fallthrough
CT: control target
= control target key end

     0   :  { %v58_v0 = vmov 0.0   ;;  %vm37_vm0 = vcmask 1041409   ;;  %vm46_vm1 = vcmask 1041408   ;;  %vm51_vm2 = vcmask 1024   ;;  %s89_s0 = inlined_call_operand.vmem [shape: f32[2,8,128], index: 0, kind: input, shape index: {}]   ;;  %s90_s1 = inlined_call_operand.vmem [shape: f32[2,8,128], index: 1, kind: input, shape index: {}]   ;;  %s91_s2 = inlined_call_operand.vmem [shape: f32[2,1], index: 2, kind: output, shape index: {}]  }
   0x1   :  { %15 = vst [vmem:[#allocation2] sm:$0x3] %v58_v0  ;;  %v16_v1 = vld [vmem:[%s89_s0] sm:$0xff]  ;;  %v17_v2 = vld [vmem:[%s89_s0 + $0x8] sm:$0xff] }
   0x2   :  { %v18_v3 = vld [vmem:[%s90_s1] sm:$0xff]  ;;  %v19_v4 = vld [vmem:[%s90_s1 + $0x8] sm:$0xff] }
   0x3   :  { %v20_v5 = vsub.f32 %v16_v1, %v18_v3  ;;  %v21_v6 = vsub.f32 %v17_v2, %v19_v4 }
   0x5   :  { %v23_v7 = vrot.slane %v20_v5, 4  ;;  %v29_v8 = vrot.slane %v21_v6, 4 }
   0x7   :  { %v24_v9 = vadd.f32 %v23_v7, %v20_v5  ;;  %v30_v10 = vadd.f32 %v29_v8, %v21_v6 }
   0x8   :  { %v22_v18 = vld [vmem:[#allocation2] sm:$0x3] }
   0x9   :  { %v25_v11 = vrot.slane %v24_v9, 2  ;;  %v31_v12 = vrot.slane %v30_v10, 2 }
   0xb   :  { %v26_v13 = vadd.f32 %v25_v11, %v24_v9  ;;  %v32_v14 = vadd.f32 %v31_v12, %v30_v10 }
   0xd   :  { %v27_v15 = vrot.slane %v26_v13, 1  ;;  %v33_v16 = vrot.slane %v32_v14, 1 }
   0xf   :  { %v28_v17 = vadd.f32 %v27_v15, %v26_v13  ;;  %v34_v19 = vadd.f32 %v33_v16, %v32_v14 }
  0x11   :  { %v38_v20 = vsel %vm37_vm0, %v34_v19, %v28_v17 }
  0x12   :  { %v40_v21 = vadd.f32 %v38_v20, %v22_v18 }
  0x14   :  { %41 = vst [vmem:[#allocation2] sm:$0x3] %v40_v21 }
  0x1b   :  { %v45_v22 = vld [vmem:[#allocation2] sm:$0x3] }
  0x1c   :  { %v47_v23 = vsel %vm46_vm1, %v45_v22, 0.0 }
  0x1d   :  { %48 = vadd.xlane.f32.xlu0 %v47_v23 }
  0xaa   :  { %v49_v24 = vpop.xlane.xlu0 %48 }
  0xab   :  { %v50_v25 = vand.u32 2147483647, %v49_v24 }
  0xad   :  { %52 = vst.msk [vmem:[%s91_s2] sm:$0x3] %vm51_vm2, %v50_v25 }

</bundles_post_ra>
